<compile_context>
chip_gen: v6e
topology: v6e:2x2x1
jax: 0.10.0
libtpu: 0.0.40
codegen_flags: <defaults>
</compile_context>

<pallas_src>
import functools
import math

import jax
import jax.numpy as jnp
from jax.experimental import pallas as pl
from jax.experimental.pallas import tpu as pltpu

_NUM_VEC_ROWS = 8  # ln0_g, ln0_b, b_qkv, bo, ln1_g, ln1_b, b1, b2


def _layer_norm(v, g, b, eps=1e-5):
    mu = jnp.mean(v, axis=-1, keepdims=True)
    var = jnp.mean((v - mu) ** 2, axis=-1, keepdims=True)
    return (v - mu) * jax.lax.rsqrt(var + eps) * g + b


def encoder_kernel(x_ref, vec_ref, wqkv_ref, wo_ref, w1_ref, w2_ref,
                   o_ref, qh_ref, kh_ref, vh_ref, ctx_ref, *, H):
    layer = pl.program_id(1)
    _, S, D = x_ref.shape
    Dh = wo_ref.shape[1]
    d_ff = w1_ref.shape[2]
    d_k = Dh // H
    scale = 1.0 / math.sqrt(d_k)

    # The carried activation lives in the resident output block (its index_map
    # is constant over the layer axis, so it never round-trips through HBM).
    @pl.when(layer == 0)
    def _():
        o_ref[0] = x_ref[0]

    x = o_ref[0]                                           # (S, D) f32

    # Coalesced per-layer small vectors: one (8, P) block per layer.
    vec = vec_ref[0]
    ln0_g = vec[0:1, :D]
    ln0_b = vec[1:2, :D]
    b_qkv = vec[2:3, :3 * Dh]
    bo = vec[3:4, :D]
    ln1_g = vec[4:5, :D]
    ln1_b = vec[5:6, :D]
    b1 = vec[6:7, :d_ff]
    b2 = vec[7:8, :D]

    # ---- sublayer 0: pre-norm multi-head self-attention + residual ----
    xn = _layer_norm(x, ln0_g, ln0_b)                      # (S, D)

    # Single fused wide projection: (S, D) @ (D, 3*Dh).
    qkv = jnp.dot(xn, wqkv_ref[0],
                  preferred_element_type=jnp.float32) + b_qkv   # (S, 3*Dh)

    # Split heads with static lane slices into VMEM scratch (layout plumbing).
    for h in range(H):
        qh_ref[h] = qkv[:, h * d_k:(h + 1) * d_k] * scale
        kh_ref[h] = qkv[:, Dh + h * d_k:Dh + (h + 1) * d_k]
        vh_ref[h] = qkv[:, 2 * Dh + h * d_k:2 * Dh + (h + 1) * d_k]

    q3 = qh_ref[...]                                       # (H, S, d_k)
    k3 = kh_ref[...]
    v3 = vh_ref[...]

    s = jnp.einsum('hqd,hkd->hqk', q3, k3,
                   preferred_element_type=jnp.float32)     # (H, S, S)
    m = jnp.max(s, axis=-1, keepdims=True)
    e = jnp.exp(s - m)
    p = e / jnp.sum(e, axis=-1, keepdims=True)             # exact softmax
    c3 = jnp.einsum('hqk,hkd->hqd', p, v3,
                    preferred_element_type=jnp.float32)    # (H, S, d_k)

    # Merge heads back to (S, Dh), then one wide output projection (K = Dh).
    for h in range(H):
        ctx_ref[:, h * d_k:(h + 1) * d_k] = c3[h]
    attn = jnp.dot(ctx_ref[...], wo_ref[0],
                   preferred_element_type=jnp.float32) + bo
    x1 = x + attn

    # ---- sublayer 1: pre-norm position-wise feed-forward + residual ----
    xn1 = _layer_norm(x1, ln1_g, ln1_b)
    h1 = jnp.maximum(
        jnp.dot(xn1, w1_ref[0], preferred_element_type=jnp.float32) + b1, 0.0)
    ff = jnp.dot(h1, w2_ref[0], preferred_element_type=jnp.float32) + b2

    o_ref[0] = x1 + ff                                     # carry to next layer


def make_encoder_call(N, B, S, D, Dh, d_ff, H):
    d_k = Dh // H
    P = max(3 * Dh, D, d_ff)

    lmap = lambda b, l: (l, 0, 0)   # per-layer weights
    bmap = lambda b, l: (b, 0, 0)   # per-batch activations (resident over l)

    kernel = functools.partial(encoder_kernel, H=H)
    return pl.pallas_call(
        kernel,
        out_shape=jax.ShapeDtypeStruct((B, S, D), jnp.float32),
        grid_spec=pltpu.PrefetchScalarGridSpec(
            num_scalar_prefetch=0,
            grid=(B, N),                                   # batch x fused layers
            in_specs=[
                pl.BlockSpec((1, S, D), bmap),             # x
                pl.BlockSpec((1, _NUM_VEC_ROWS, P), lmap), # coalesced vectors
                pl.BlockSpec((1, D, 3 * Dh), lmap),        # W_qkv
                pl.BlockSpec((1, Dh, D), lmap),            # W_o
                pl.BlockSpec((1, D, d_ff), lmap),          # W_1
                pl.BlockSpec((1, d_ff, D), lmap),          # W_2
            ],
            out_specs=pl.BlockSpec((1, S, D), bmap),
            scratch_shapes=[
                pltpu.VMEM((H, S, d_k), jnp.float32),      # q heads
                pltpu.VMEM((H, S, d_k), jnp.float32),      # k heads
                pltpu.VMEM((H, S, d_k), jnp.float32),      # v heads
                pltpu.VMEM((S, Dh), jnp.float32),          # merged context
            ],
        ),
        compiler_params=pltpu.CompilerParams(
            dimension_semantics=("parallel", "arbitrary"),
            vmem_limit_bytes=32 * 1024 * 1024,
        ),
    )


# ---------------- parameter construction (deterministic, in-script) ----------


def _xavier_uniform(key, shape):
    fan_in, fan_out = shape
    a = math.sqrt(6.0 / (fan_in + fan_out))
    return jax.random.uniform(key, shape, jnp.float32, -a, a)


def init_layer_params(key, D, Dh, d_ff):
    ks = jax.random.split(key, 12)
    nrm = lambda k, s: 0.1 * jax.random.normal(k, s, jnp.float32)
    return {
        "ln0_g": jnp.ones((1, D), jnp.float32),
        "ln0_b": jnp.zeros((1, D), jnp.float32),
        "wq": _xavier_uniform(ks[0], (D, Dh)), "bq": nrm(ks[6], (1, Dh)),
        "wk": _xavier_uniform(ks[1], (D, Dh)), "bk": nrm(ks[7], (1, Dh)),
        "wv": _xavier_uniform(ks[2], (D, Dh)), "bv": nrm(ks[8], (1, Dh)),
        "wo": _xavier_uniform(ks[3], (Dh, D)), "bo": nrm(ks[9], (1, D)),
        "ln1_g": jnp.ones((1, D), jnp.float32),
        "ln1_b": jnp.zeros((1, D), jnp.float32),
        "w1": _xavier_uniform(ks[4], (D, d_ff)), "b1": nrm(ks[10], (1, d_ff)),
        "w2": _xavier_uniform(ks[5], (d_ff, D)), "b2": nrm(ks[11], (1, D)),
    }


def pack_params(layers):
    """Stack per-layer params on a leading N axis.

    Attention projection weights are fused to (D, 3*Dh); all small vectors are
    coalesced into one (N, 8, P) tensor so each layer needs a single tiny DMA.
    """
    D, Dh = layers[0]["wq"].shape
    d_ff = layers[0]["w1"].shape[1]
    P = max(3 * Dh, D, d_ff)

    def pad(v):  # v: (1, w) -> (1, P)
        return jnp.pad(v, ((0, 0), (0, P - v.shape[1])))

    vecs = []
    for p in layers:
        rows = jnp.concatenate([
            pad(p["ln0_g"]), pad(p["ln0_b"]),
            pad(jnp.concatenate([p["bq"], p["bk"], p["bv"]], axis=1)),
            pad(p["bo"]), pad(p["ln1_g"]), pad(p["ln1_b"]),
            pad(p["b1"]), pad(p["b2"]),
        ], axis=0)                                         # (8, P)
        vecs.append(rows)

    return {
        "vecs": jnp.stack(vecs, axis=0),                    # (N, 8, P)
        "wqkv": jnp.stack(
            [jnp.concatenate([p["wq"], p["wk"], p["wv"]], axis=1)
             for p in layers], axis=0),                     # (N, D, 3*Dh)
        "wo": jnp.stack([p["wo"] for p in layers], axis=0),  # (N, Dh, D)
        "w1": jnp.stack([p["w1"] for p in layers], axis=0),  # (N, D, d_ff)
        "w2": jnp.stack([p["w2"] for p in layers], axis=0),  # (N, d_ff, D)
    }


def encoder_forward(x, layers, H):
    B, S, D = x.shape
    N = len(layers)
    Dh = layers[0]["wq"].shape[1]
    d_ff = layers[0]["w1"].shape[1]
    pk = pack_params(layers)
    call = make_encoder_call(N, B, S, D, Dh, d_ff, H)
    return call(x, pk["vecs"], pk["wqkv"], pk["wo"], pk["w1"], pk["w2"])


# ---------------- pure-JAX reference for verification ------------------------


def _ref_layer(x, p, H):
    Dh = p["wq"].shape[1]
    d_k = Dh // H

    def ln(v, g, b):
        mu = v.mean(-1, keepdims=True)
        var = ((v - mu) ** 2).mean(-1, keepdims=True)
        return (v - mu) / jnp.sqrt(var + 1e-5) * g + b

    xn = ln(x, p["ln0_g"][0], p["ln0_b"][0])
    q = xn @ p["wq"] + p["bq"][0]
    k = xn @ p["wk"] + p["bk"][0]
    v = xn @ p["wv"] + p["bv"][0]
    B, S, _ = x.shape
    qh = q.reshape(B, S, H, d_k).transpose(0, 2, 1, 3)
    kh = k.reshape(B, S, H, d_k).transpose(0, 2, 1, 3)
    vh = v.reshape(B, S, H, d_k).transpose(0, 2, 1, 3)
    s = jnp.einsum("bhqd,bhkd->bhqk", qh, kh) / math.sqrt(d_k)
    pr = jax.nn.softmax(s, axis=-1)
    a = jnp.einsum("bhqk,bhkd->bhqd", pr, vh)
    a = a.transpose(0, 2, 1, 3).reshape(B, S, Dh)
    x1 = x + (a @ p["wo"] + p["bo"][0])
    xn1 = ln(x1, p["ln1_g"][0], p["ln1_b"][0])
    h = jax.nn.relu(xn1 @ p["w1"] + p["b1"][0])
    return x1 + (h @ p["w2"] + p["b2"][0])


def encoder_reference(x, layers, H):
    for p in layers:
        x = _ref_layer(x, p, H)
    return x


if __name__ == "__main__":
    # Encoder(d_model=32, dout_p=0.0, H=4, d_ff=64, N=2, d_hidden=32)
    B, S, D, H, d_ff, N, Dh = 2, 8, 32, 4, 64, 2, 32

    key = jax.random.PRNGKey(0)
    kx, kp = jax.random.split(key)
    x = jax.random.normal(kx, (B, S, D), jnp.float32)
    layer_keys = jax.random.split(kp, N)
    layers = [init_layer_params(layer_keys[i], D, Dh, d_ff) for i in range(N)]

    out = encoder_forward(x, layers, H)
    out = jax.block_until_ready(out)

    ref = encoder_reference(x, layers, H)
    assert out.shape == (B, S, D)
    max_err = float(jnp.max(jnp.abs(out - ref)))
    assert jnp.allclose(out, ref, rtol=2e-3, atol=2e-3), (
        f"mismatch vs JAX reference (max abs err {max_err})")
    print("KERNEL_OK")
</pallas_src>

<mosaic_0001>
module attributes {stable_mosaic.version = 11 : i64} {
  func.func @encoder_kernel(%arg0: i32, %arg1: i32, %arg2: memref<1x8x32xf32, #tpu.memory_space<vmem>>, %arg3: memref<1x8x96xf32, #tpu.memory_space<vmem>>, %arg4: memref<1x32x96xf32, #tpu.memory_space<vmem>>, %arg5: memref<1x32x32xf32, #tpu.memory_space<vmem>>, %arg6: memref<1x32x64xf32, #tpu.memory_space<vmem>>, %arg7: memref<1x64x32xf32, #tpu.memory_space<vmem>>, %arg8: memref<1x8x32xf32, #tpu.memory_space<vmem>>, %arg9: memref<4x8x8xf32, #tpu.memory_space<vmem>>, %arg10: memref<4x8x8xf32, #tpu.memory_space<vmem>>, %arg11: memref<4x8x8xf32, #tpu.memory_space<vmem>>, %arg12: memref<8x32xf32, #tpu.memory_space<vmem>>) attributes {dimension_semantics = [#tpu.dimension_semantics<parallel>, #tpu.dimension_semantics<arbitrary>], iteration_bounds = array<i64: 2, 2>, scalar_prefetch = 0 : i64, scratch_operands = 4 : i64, tpu.core_type = #tpu.core_type<tc>, window_params = [{transform_indices = @transform_0, window_bounds = array<i64: 1, 8, 32>}, {transform_indices = @transform_1, window_bounds = array<i64: 1, 8, 96>}, {transform_indices = @transform_2, window_bounds = array<i64: 1, 32, 96>}, {transform_indices = @transform_3, window_bounds = array<i64: 1, 32, 32>}, {transform_indices = @transform_4, window_bounds = array<i64: 1, 32, 64>}, {transform_indices = @transform_5, window_bounds = array<i64: 1, 64, 32>}, {transform_indices = @transform_6, window_bounds = array<i64: 1, 8, 32>}]} {
    %c0_i32 = arith.constant 0 : i32
    %0 = arith.cmpi eq, %arg1, %c0_i32 : i32
    %1 = arith.extui %0 : i1 to i32
    %c0_i32_0 = arith.constant 0 : i32
    %2 = arith.cmpi ne, %1, %c0_i32_0 : i32
    scf.if %2 {
      %c0_92 = arith.constant 0 : index
      %c0_93 = arith.constant 0 : index
      %c0_94 = arith.constant 0 : index
      %169 = vector.load %arg2[%c0_92, %c0_93, %c0_94] : memref<1x8x32xf32, #tpu.memory_space<vmem>>, vector<1x8x32xf32>
      %170 = vector.shape_cast %169 : vector<1x8x32xf32> to vector<8x32xf32>
      %c0_95 = arith.constant 0 : index
      %c0_96 = arith.constant 0 : index
      %c0_97 = arith.constant 0 : index
      %171 = vector.load %arg8[%c0_95, %c0_96, %c0_97] : memref<1x8x32xf32, #tpu.memory_space<vmem>>, vector<1x8x32xf32>
      %172 = vector.shape_cast %171 : vector<1x8x32xf32> to vector<8x32xf32>
      %173 = vector.shape_cast %170 : vector<8x32xf32> to vector<1x8x32xf32>
      tpu.vector_store %arg8[%c0_95, %c0_96, %c0_97], %173 {strides = array<i32>} : memref<1x8x32xf32, #tpu.memory_space<vmem>>, vector<1x8x32xf32>,
    } else {
    }
    %c0 = arith.constant 0 : index
    %c0_1 = arith.constant 0 : index
    %c0_2 = arith.constant 0 : index
    %3 = vector.load %arg8[%c0, %c0_1, %c0_2] : memref<1x8x32xf32, #tpu.memory_space<vmem>>, vector<1x8x32xf32>
    %4 = vector.shape_cast %3 : vector<1x8x32xf32> to vector<8x32xf32>
    %c0_3 = arith.constant 0 : index
    %c0_4 = arith.constant 0 : index
    %c0_5 = arith.constant 0 : index
    %5 = vector.load %arg3[%c0_3, %c0_4, %c0_5] : memref<1x8x96xf32, #tpu.memory_space<vmem>>, vector<1x8x96xf32>
    %6 = vector.shape_cast %5 : vector<1x8x96xf32> to vector<8x96xf32>
    %7 = vector.extract_strided_slice %6 {offsets = [0, 0], sizes = [1, 32], strides = [1, 1]} : vector<8x96xf32> to vector<1x32xf32>
    %8 = vector.extract_strided_slice %6 {offsets = [1, 0], sizes = [1, 32], strides = [1, 1]} : vector<8x96xf32> to vector<1x32xf32>
    %9 = vector.extract_strided_slice %6 {offsets = [2, 0], sizes = [1, 96], strides = [1, 1]} : vector<8x96xf32> to vector<1x96xf32>
    %10 = vector.extract_strided_slice %6 {offsets = [3, 0], sizes = [1, 32], strides = [1, 1]} : vector<8x96xf32> to vector<1x32xf32>
    %11 = vector.extract_strided_slice %6 {offsets = [4, 0], sizes = [1, 32], strides = [1, 1]} : vector<8x96xf32> to vector<1x32xf32>
    %12 = vector.extract_strided_slice %6 {offsets = [5, 0], sizes = [1, 32], strides = [1, 1]} : vector<8x96xf32> to vector<1x32xf32>
    %13 = vector.extract_strided_slice %6 {offsets = [6, 0], sizes = [1, 64], strides = [1, 1]} : vector<8x96xf32> to vector<1x64xf32>
    %14 = vector.extract_strided_slice %6 {offsets = [7, 0], sizes = [1, 32], strides = [1, 1]} : vector<8x96xf32> to vector<1x32xf32>
    %cst = arith.constant dense<0.000000e+00> : vector<8xf32>
    %15 = vector.multi_reduction <add>, %4, %cst [1] : vector<8x32xf32> to vector<8xf32>
    %16 = vector.shape_cast %15 : vector<8xf32> to vector<8x1xf32>
    %cst_6 = arith.constant 3.200000e+01 : f32
    %17 = vector.broadcast %cst_6 : f32 to vector<8x1xf32>
    %18 = arith.divf %16, %17 : vector<8x1xf32>
    %19 = vector.broadcast %18 : vector<8x1xf32> to vector<8x32xf32>
    %20 = arith.subf %4, %19 : vector<8x32xf32>
    %21 = arith.mulf %20, %20 : vector<8x32xf32>
    %cst_7 = arith.constant dense<0.000000e+00> : vector<8xf32>
    %22 = vector.multi_reduction <add>, %21, %cst_7 [1] : vector<8x32xf32> to vector<8xf32>
    %23 = vector.shape_cast %22 : vector<8xf32> to vector<8x1xf32>
    %cst_8 = arith.constant 3.200000e+01 : f32
    %24 = vector.broadcast %cst_8 : f32 to vector<8x1xf32>
    %25 = arith.divf %23, %24 : vector<8x1xf32>
    %26 = vector.broadcast %18 : vector<8x1xf32> to vector<8x32xf32>
    %27 = arith.subf %4, %26 : vector<8x32xf32>
    %cst_9 = arith.constant 9.99999974E-6 : f32
    %28 = vector.broadcast %cst_9 : f32 to vector<8x1xf32>
    %29 = arith.addf %25, %28 : vector<8x1xf32>
    %30 = math.rsqrt %29 : vector<8x1xf32>
    %31 = vector.broadcast %30 : vector<8x1xf32> to vector<8x32xf32>
    %32 = arith.mulf %27, %31 : vector<8x32xf32>
    %33 = vector.broadcast %7 : vector<1x32xf32> to vector<8x32xf32>
    %34 = arith.mulf %32, %33 : vector<8x32xf32>
    %35 = vector.broadcast %8 : vector<1x32xf32> to vector<8x32xf32>
    %36 = arith.addf %34, %35 : vector<8x32xf32>
    %c0_10 = arith.constant 0 : index
    %c0_11 = arith.constant 0 : index
    %c0_12 = arith.constant 0 : index
    %37 = vector.load %arg4[%c0_10, %c0_11, %c0_12] : memref<1x32x96xf32, #tpu.memory_space<vmem>>, vector<1x32x96xf32>
    %38 = vector.shape_cast %37 : vector<1x32x96xf32> to vector<32x96xf32>
    %cst_13 = arith.constant dense<0.000000e+00> : vector<8x96xf32>
    %39 = tpu.matmul %36, %38, %cst_13 {dimension_numbers = #tpu.dot_dimension_numbers<[1], [0], [0], [1], [0, 0, 1, 1], [], []>} : vector<8x32xf32>, vector<32x96xf32>, vector<8x96xf32> -> vector<8x96xf32>
    %40 = vector.broadcast %9 : vector<1x96xf32> to vector<8x96xf32>
    %41 = arith.addf %39, %40 : vector<8x96xf32>
    %42 = vector.extract_strided_slice %41 {offsets = [0, 0], sizes = [8, 8], strides = [1, 1]} : vector<8x96xf32> to vector<8x8xf32>
    %cst_14 = arith.constant 0.353553385 : f32
    %43 = vector.broadcast %cst_14 : f32 to vector<8x8xf32>
    %44 = arith.mulf %42, %43 : vector<8x8xf32>
    %c0_15 = arith.constant 0 : index
    %c0_16 = arith.constant 0 : index
    %c0_17 = arith.constant 0 : index
    %45 = vector.load %arg9[%c0_15, %c0_16, %c0_17] : memref<4x8x8xf32, #tpu.memory_space<vmem>>, vector<1x8x8xf32>
    %46 = vector.shape_cast %45 : vector<1x8x8xf32> to vector<8x8xf32>
    %47 = vector.shape_cast %44 : vector<8x8xf32> to vector<1x8x8xf32>
    tpu.vector_store %arg9[%c0_15, %c0_16, %c0_17], %47 {strides = array<i32>} : memref<4x8x8xf32, #tpu.memory_space<vmem>>, vector<1x8x8xf32>,
    %48 = vector.extract_strided_slice %41 {offsets = [0, 32], sizes = [8, 8], strides = [1, 1]} : vector<8x96xf32> to vector<8x8xf32>
    %c0_18 = arith.constant 0 : index
    %c0_19 = arith.constant 0 : index
    %c0_20 = arith.constant 0 : index
    %49 = vector.load %arg10[%c0_18, %c0_19, %c0_20] : memref<4x8x8xf32, #tpu.memory_space<vmem>>, vector<1x8x8xf32>
    %50 = vector.shape_cast %49 : vector<1x8x8xf32> to vector<8x8xf32>
    %51 = vector.shape_cast %48 : vector<8x8xf32> to vector<1x8x8xf32>
    tpu.vector_store %arg10[%c0_18, %c0_19, %c0_20], %51 {strides = array<i32>} : memref<4x8x8xf32, #tpu.memory_space<vmem>>, vector<1x8x8xf32>,
    %52 = vector.extract_strided_slice %41 {offsets = [0, 64], sizes = [8, 8], strides = [1, 1]} : vector<8x96xf32> to vector<8x8xf32>
    %c0_21 = arith.constant 0 : index
    %c0_22 = arith.constant 0 : index
    %c0_23 = arith.constant 0 : index
    %53 = vector.load %arg11[%c0_21, %c0_22, %c0_23] : memref<4x8x8xf32, #tpu.memory_space<vmem>>, vector<1x8x8xf32>
    %54 = vector.shape_cast %53 : vector<1x8x8xf32> to vector<8x8xf32>
    %55 = vector.shape_cast %52 : vector<8x8xf32> to vector<1x8x8xf32>
    tpu.vector_store %arg11[%c0_21, %c0_22, %c0_23], %55 {strides = array<i32>} : memref<4x8x8xf32, #tpu.memory_space<vmem>>, vector<1x8x8xf32>,
    %56 = vector.extract_strided_slice %41 {offsets = [0, 8], sizes = [8, 8], strides = [1, 1]} : vector<8x96xf32> to vector<8x8xf32>
    %cst_24 = arith.constant 0.353553385 : f32
    %57 = vector.broadcast %cst_24 : f32 to vector<8x8xf32>
    %58 = arith.mulf %56, %57 : vector<8x8xf32>
    %c1 = arith.constant 1 : index
    %c0_25 = arith.constant 0 : index
    %c0_26 = arith.constant 0 : index
    %59 = vector.load %arg9[%c1, %c0_25, %c0_26] : memref<4x8x8xf32, #tpu.memory_space<vmem>>, vector<1x8x8xf32>
    %60 = vector.shape_cast %59 : vector<1x8x8xf32> to vector<8x8xf32>
    %61 = vector.shape_cast %58 : vector<8x8xf32> to vector<1x8x8xf32>
    tpu.vector_store %arg9[%c1, %c0_25, %c0_26], %61 {strides = array<i32>} : memref<4x8x8xf32, #tpu.memory_space<vmem>>, vector<1x8x8xf32>,
    %62 = vector.extract_strided_slice %41 {offsets = [0, 40], sizes = [8, 8], strides = [1, 1]} : vector<8x96xf32> to vector<8x8xf32>
    %c1_27 = arith.constant 1 : index
    %c0_28 = arith.constant 0 : index
    %c0_29 = arith.constant 0 : index
    %63 = vector.load %arg10[%c1_27, %c0_28, %c0_29] : memref<4x8x8xf32, #tpu.memory_space<vmem>>, vector<1x8x8xf32>
    %64 = vector.shape_cast %63 : vector<1x8x8xf32> to vector<8x8xf32>
    %65 = vector.shape_cast %62 : vector<8x8xf32> to vector<1x8x8xf32>
    tpu.vector_store %arg10[%c1_27, %c0_28, %c0_29], %65 {strides = array<i32>} : memref<4x8x8xf32, #tpu.memory_space<vmem>>, vector<1x8x8xf32>,
    %66 = vector.extract_strided_slice %41 {offsets = [0, 72], sizes = [8, 8], strides = [1, 1]} : vector<8x96xf32> to vector<8x8xf32>
    %c1_30 = arith.constant 1 : index
    %c0_31 = arith.constant 0 : index
    %c0_32 = arith.constant 0 : index
    %67 = vector.load %arg11[%c1_30, %c0_31, %c0_32] : memref<4x8x8xf32, #tpu.memory_space<vmem>>, vector<1x8x8xf32>
    %68 = vector.shape_cast %67 : vector<1x8x8xf32> to vector<8x8xf32>
    %69 = vector.shape_cast %66 : vector<8x8xf32> to vector<1x8x8xf32>
    tpu.vector_store %arg11[%c1_30, %c0_31, %c0_32], %69 {strides = array<i32>} : memref<4x8x8xf32, #tpu.memory_space<vmem>>, vector<1x8x8xf32>,
    %70 = vector.extract_strided_slice %41 {offsets = [0, 16], sizes = [8, 8], strides = [1, 1]} : vector<8x96xf32> to vector<8x8xf32>
    %cst_33 = arith.constant 0.353553385 : f32
    %71 = vector.broadcast %cst_33 : f32 to vector<8x8xf32>
    %72 = arith.mulf %70, %71 : vector<8x8xf32>
    %c2 = arith.constant 2 : index
    %c0_34 = arith.constant 0 : index
    %c0_35 = arith.constant 0 : index
    %73 = vector.load %arg9[%c2, %c0_34, %c0_35] : memref<4x8x8xf32, #tpu.memory_space<vmem>>, vector<1x8x8xf32>
    %74 = vector.shape_cast %73 : vector<1x8x8xf32> to vector<8x8xf32>
    %75 = vector.shape_cast %72 : vector<8x8xf32> to vector<1x8x8xf32>
    tpu.vector_store %arg9[%c2, %c0_34, %c0_35], %75 {strides = array<i32>} : memref<4x8x8xf32, #tpu.memory_space<vmem>>, vector<1x8x8xf32>,
    %76 = vector.extract_strided_slice %41 {offsets = [0, 48], sizes = [8, 8], strides = [1, 1]} : vector<8x96xf32> to vector<8x8xf32>
    %c2_36 = arith.constant 2 : index
    %c0_37 = arith.constant 0 : index
    %c0_38 = arith.constant 0 : index
    %77 = vector.load %arg10[%c2_36, %c0_37, %c0_38] : memref<4x8x8xf32, #tpu.memory_space<vmem>>, vector<1x8x8xf32>
    %78 = vector.shape_cast %77 : vector<1x8x8xf32> to vector<8x8xf32>
    %79 = vector.shape_cast %76 : vector<8x8xf32> to vector<1x8x8xf32>
    tpu.vector_store %arg10[%c2_36, %c0_37, %c0_38], %79 {strides = array<i32>} : memref<4x8x8xf32, #tpu.memory_space<vmem>>, vector<1x8x8xf32>,
    %80 = vector.extract_strided_slice %41 {offsets = [0, 80], sizes = [8, 8], strides = [1, 1]} : vector<8x96xf32> to vector<8x8xf32>
    %c2_39 = arith.constant 2 : index
    %c0_40 = arith.constant 0 : index
    %c0_41 = arith.constant 0 : index
    %81 = vector.load %arg11[%c2_39, %c0_40, %c0_41] : memref<4x8x8xf32, #tpu.memory_space<vmem>>, vector<1x8x8xf32>
    %82 = vector.shape_cast %81 : vector<1x8x8xf32> to vector<8x8xf32>
    %83 = vector.shape_cast %80 : vector<8x8xf32> to vector<1x8x8xf32>
    tpu.vector_store %arg11[%c2_39, %c0_40, %c0_41], %83 {strides = array<i32>} : memref<4x8x8xf32, #tpu.memory_space<vmem>>, vector<1x8x8xf32>,
    %84 = vector.extract_strided_slice %41 {offsets = [0, 24], sizes = [8, 8], strides = [1, 1]} : vector<8x96xf32> to vector<8x8xf32>
    %cst_42 = arith.constant 0.353553385 : f32
    %85 = vector.broadcast %cst_42 : f32 to vector<8x8xf32>
    %86 = arith.mulf %84, %85 : vector<8x8xf32>
    %c3 = arith.constant 3 : index
    %c0_43 = arith.constant 0 : index
    %c0_44 = arith.constant 0 : index
    %87 = vector.load %arg9[%c3, %c0_43, %c0_44] : memref<4x8x8xf32, #tpu.memory_space<vmem>>, vector<1x8x8xf32>
    %88 = vector.shape_cast %87 : vector<1x8x8xf32> to vector<8x8xf32>
    %89 = vector.shape_cast %86 : vector<8x8xf32> to vector<1x8x8xf32>
    tpu.vector_store %arg9[%c3, %c0_43, %c0_44], %89 {strides = array<i32>} : memref<4x8x8xf32, #tpu.memory_space<vmem>>, vector<1x8x8xf32>,
    %90 = vector.extract_strided_slice %41 {offsets = [0, 56], sizes = [8, 8], strides = [1, 1]} : vector<8x96xf32> to vector<8x8xf32>
    %c3_45 = arith.constant 3 : index
    %c0_46 = arith.constant 0 : index
    %c0_47 = arith.constant 0 : index
    %91 = vector.load %arg10[%c3_45, %c0_46, %c0_47] : memref<4x8x8xf32, #tpu.memory_space<vmem>>, vector<1x8x8xf32>
    %92 = vector.shape_cast %91 : vector<1x8x8xf32> to vector<8x8xf32>
    %93 = vector.shape_cast %90 : vector<8x8xf32> to vector<1x8x8xf32>
    tpu.vector_store %arg10[%c3_45, %c0_46, %c0_47], %93 {strides = array<i32>} : memref<4x8x8xf32, #tpu.memory_space<vmem>>, vector<1x8x8xf32>,
    %94 = vector.extract_strided_slice %41 {offsets = [0, 88], sizes = [8, 8], strides = [1, 1]} : vector<8x96xf32> to vector<8x8xf32>
    %c3_48 = arith.constant 3 : index
    %c0_49 = arith.constant 0 : index
    %c0_50 = arith.constant 0 : index
    %95 = vector.load %arg11[%c3_48, %c0_49, %c0_50] : memref<4x8x8xf32, #tpu.memory_space<vmem>>, vector<1x8x8xf32>
    %96 = vector.shape_cast %95 : vector<1x8x8xf32> to vector<8x8xf32>
    %97 = vector.shape_cast %94 : vector<8x8xf32> to vector<1x8x8xf32>
    tpu.vector_store %arg11[%c3_48, %c0_49, %c0_50], %97 {strides = array<i32>} : memref<4x8x8xf32, #tpu.memory_space<vmem>>, vector<1x8x8xf32>,
    %c0_51 = arith.constant 0 : index
    %c0_52 = arith.constant 0 : index
    %c0_53 = arith.constant 0 : index
    %98 = vector.load %arg9[%c0_51, %c0_52, %c0_53] : memref<4x8x8xf32, #tpu.memory_space<vmem>>, vector<4x8x8xf32>
    %c0_54 = arith.constant 0 : index
    %c0_55 = arith.constant 0 : index
    %c0_56 = arith.constant 0 : index
    %99 = vector.load %arg10[%c0_54, %c0_55, %c0_56] : memref<4x8x8xf32, #tpu.memory_space<vmem>>, vector<4x8x8xf32>
    %c0_57 = arith.constant 0 : index
    %c0_58 = arith.constant 0 : index
    %c0_59 = arith.constant 0 : index
    %100 = vector.load %arg11[%c0_57, %c0_58, %c0_59] : memref<4x8x8xf32, #tpu.memory_space<vmem>>, vector<4x8x8xf32>
    "tpu.trace_start"() <{level = 10 : i32, message = "hqd,hkd->hqk"}> : () -> ()
    %cst_60 = arith.constant dense<0.000000e+00> : vector<4x8x8xf32>
    %101 = tpu.matmul %98, %99, %cst_60 {dimension_numbers = #tpu.dot_dimension_numbers<[2], [2], [1], [1], [0, 0, 0, 1, 1, 1], [0], [0]>} : vector<4x8x8xf32>, vector<4x8x8xf32>, vector<4x8x8xf32> -> vector<4x8x8xf32>
    "tpu.trace_stop"() : () -> ()
    %cst_61 = arith.constant dense<0xFF800000> : vector<4x8xf32>
    %102 = vector.multi_reduction <maximumf>, %101, %cst_61 [2] : vector<4x8x8xf32> to vector<4x8xf32>
    %103 = vector.shape_cast %102 : vector<4x8xf32> to vector<4x8x1xf32>
    %104 = vector.broadcast %103 : vector<4x8x1xf32> to vector<4x8x8xf32>
    %105 = arith.subf %101, %104 : vector<4x8x8xf32>
    %106 = math.exp %105 : vector<4x8x8xf32>
    %cst_62 = arith.constant dense<0.000000e+00> : vector<4x8xf32>
    %107 = vector.multi_reduction <add>, %106, %cst_62 [2] : vector<4x8x8xf32> to vector<4x8xf32>
    %108 = vector.shape_cast %107 : vector<4x8xf32> to vector<4x8x1xf32>
    %109 = vector.broadcast %108 : vector<4x8x1xf32> to vector<4x8x8xf32>
    %110 = arith.divf %106, %109 : vector<4x8x8xf32>
    "tpu.trace_start"() <{level = 10 : i32, message = "hqk,hkd->hqd"}> : () -> ()
    %cst_63 = arith.constant dense<0.000000e+00> : vector<4x8x8xf32>
    %111 = tpu.matmul %110, %100, %cst_63 {dimension_numbers = #tpu.dot_dimension_numbers<[2], [1], [1], [2], [0, 0, 0, 1, 1, 2], [0], [0]>} : vector<4x8x8xf32>, vector<4x8x8xf32>, vector<4x8x8xf32> -> vector<4x8x8xf32>
    "tpu.trace_stop"() : () -> ()
    %112 = vector.extract_strided_slice %111 {offsets = [0, 0, 0], sizes = [1, 8, 8], strides = [1, 1, 1]} : vector<4x8x8xf32> to vector<1x8x8xf32>
    %113 = vector.shape_cast %112 : vector<1x8x8xf32> to vector<8x8xf32>
    %c0_64 = arith.constant 0 : index
    %c0_65 = arith.constant 0 : index
    %114 = vector.load %arg12[%c0_64, %c0_65] : memref<8x32xf32, #tpu.memory_space<vmem>>, vector<8x8xf32>
    tpu.vector_store %arg12[%c0_64, %c0_65], %113 {strides = array<i32>} : memref<8x32xf32, #tpu.memory_space<vmem>>, vector<8x8xf32>,
    %115 = vector.extract_strided_slice %111 {offsets = [1, 0, 0], sizes = [1, 8, 8], strides = [1, 1, 1]} : vector<4x8x8xf32> to vector<1x8x8xf32>
    %116 = vector.shape_cast %115 : vector<1x8x8xf32> to vector<8x8xf32>
    %c0_66 = arith.constant 0 : index
    %c8 = arith.constant 8 : index
    %117 = vector.load %arg12[%c0_66, %c8] : memref<8x32xf32, #tpu.memory_space<vmem>>, vector<8x8xf32>
    tpu.vector_store %arg12[%c0_66, %c8], %116 {strides = array<i32>} : memref<8x32xf32, #tpu.memory_space<vmem>>, vector<8x8xf32>,
    %118 = vector.extract_strided_slice %111 {offsets = [2, 0, 0], sizes = [1, 8, 8], strides = [1, 1, 1]} : vector<4x8x8xf32> to vector<1x8x8xf32>
    %119 = vector.shape_cast %118 : vector<1x8x8xf32> to vector<8x8xf32>
    %c0_67 = arith.constant 0 : index
    %c16 = arith.constant 16 : index
    %120 = vector.load %arg12[%c0_67, %c16] : memref<8x32xf32, #tpu.memory_space<vmem>>, vector<8x8xf32>
    tpu.vector_store %arg12[%c0_67, %c16], %119 {strides = array<i32>} : memref<8x32xf32, #tpu.memory_space<vmem>>, vector<8x8xf32>,
    %121 = vector.extract_strided_slice %111 {offsets = [3, 0, 0], sizes = [1, 8, 8], strides = [1, 1, 1]} : vector<4x8x8xf32> to vector<1x8x8xf32>
    %122 = vector.shape_cast %121 : vector<1x8x8xf32> to vector<8x8xf32>
    %c0_68 = arith.constant 0 : index
    %c24 = arith.constant 24 : index
    %123 = vector.load %arg12[%c0_68, %c24] : memref<8x32xf32, #tpu.memory_space<vmem>>, vector<8x8xf32>
    tpu.vector_store %arg12[%c0_68, %c24], %122 {strides = array<i32>} : memref<8x32xf32, #tpu.memory_space<vmem>>, vector<8x8xf32>,
    %c0_69 = arith.constant 0 : index
    %c0_70 = arith.constant 0 : index
    %124 = vector.load %arg12[%c0_69, %c0_70] : memref<8x32xf32, #tpu.memory_space<vmem>>, vector<8x32xf32>
    %c0_71 = arith.constant 0 : index
    %c0_72 = arith.constant 0 : index
    %c0_73 = arith.constant 0 : index
    %125 = vector.load %arg5[%c0_71, %c0_72, %c0_73] : memref<1x32x32xf32, #tpu.memory_space<vmem>>, vector<1x32x32xf32>
    %126 = vector.shape_cast %125 : vector<1x32x32xf32> to vector<32x32xf32>
    %cst_74 = arith.constant dense<0.000000e+00> : vector<8x32xf32>
    %127 = tpu.matmul %124, %126, %cst_74 {dimension_numbers = #tpu.dot_dimension_numbers<[1], [0], [0], [1], [0, 0, 1, 1], [], []>} : vector<8x32xf32>, vector<32x32xf32>, vector<8x32xf32> -> vector<8x32xf32>
    %128 = vector.broadcast %10 : vector<1x32xf32> to vector<8x32xf32>
    %129 = arith.addf %127, %128 : vector<8x32xf32>
    %130 = arith.addf %4, %129 : vector<8x32xf32>
    %cst_75 = arith.constant dense<0.000000e+00> : vector<8xf32>
    %131 = vector.multi_reduction <add>, %130, %cst_75 [1] : vector<8x32xf32> to vector<8xf32>
    %132 = vector.shape_cast %131 : vector<8xf32> to vector<8x1xf32>
    %cst_76 = arith.constant 3.200000e+01 : f32
    %133 = vector.broadcast %cst_76 : f32 to vector<8x1xf32>
    %134 = arith.divf %132, %133 : vector<8x1xf32>
    %135 = vector.broadcast %134 : vector<8x1xf32> to vector<8x32xf32>
    %136 = arith.subf %130, %135 : vector<8x32xf32>
    %137 = arith.mulf %136, %136 : vector<8x32xf32>
    %cst_77 = arith.constant dense<0.000000e+00> : vector<8xf32>
    %138 = vector.multi_reduction <add>, %137, %cst_77 [1] : vector<8x32xf32> to vector<8xf32>
    %139 = vector.shape_cast %138 : vector<8xf32> to vector<8x1xf32>
    %cst_78 = arith.constant 3.200000e+01 : f32
    %140 = vector.broadcast %cst_78 : f32 to vector<8x1xf32>
    %141 = arith.divf %139, %140 : vector<8x1xf32>
    %142 = vector.broadcast %134 : vector<8x1xf32> to vector<8x32xf32>
    %143 = arith.subf %130, %142 : vector<8x32xf32>
    %cst_79 = arith.constant 9.99999974E-6 : f32
    %144 = vector.broadcast %cst_79 : f32 to vector<8x1xf32>
    %145 = arith.addf %141, %144 : vector<8x1xf32>
    %146 = math.rsqrt %145 : vector<8x1xf32>
    %147 = vector.broadcast %146 : vector<8x1xf32> to vector<8x32xf32>
    %148 = arith.mulf %143, %147 : vector<8x32xf32>
    %149 = vector.broadcast %11 : vector<1x32xf32> to vector<8x32xf32>
    %150 = arith.mulf %148, %149 : vector<8x32xf32>
    %151 = vector.broadcast %12 : vector<1x32xf32> to vector<8x32xf32>
    %152 = arith.addf %150, %151 : vector<8x32xf32>
    %c0_80 = arith.constant 0 : index
    %c0_81 = arith.constant 0 : index
    %c0_82 = arith.constant 0 : index
    %153 = vector.load %arg6[%c0_80, %c0_81, %c0_82] : memref<1x32x64xf32, #tpu.memory_space<vmem>>, vector<1x32x64xf32>
    %154 = vector.shape_cast %153 : vector<1x32x64xf32> to vector<32x64xf32>
    %cst_83 = arith.constant dense<0.000000e+00> : vector<8x64xf32>
    %155 = tpu.matmul %152, %154, %cst_83 {dimension_numbers = #tpu.dot_dimension_numbers<[1], [0], [0], [1], [0, 0, 1, 1], [], []>} : vector<8x32xf32>, vector<32x64xf32>, vector<8x64xf32> -> vector<8x64xf32>
    %156 = vector.broadcast %13 : vector<1x64xf32> to vector<8x64xf32>
    %157 = arith.addf %155, %156 : vector<8x64xf32>
    %cst_84 = arith.constant 0.000000e+00 : f32
    %158 = vector.broadcast %cst_84 : f32 to vector<8x64xf32>
    %159 = arith.maximumf %157, %158 : vector<8x64xf32>
    %c0_85 = arith.constant 0 : index
    %c0_86 = arith.constant 0 : index
    %c0_87 = arith.constant 0 : index
    %160 = vector.load %arg7[%c0_85, %c0_86, %c0_87] : memref<1x64x32xf32, #tpu.memory_space<vmem>>, vector<1x64x32xf32>
    %161 = vector.shape_cast %160 : vector<1x64x32xf32> to vector<64x32xf32>
    %cst_88 = arith.constant dense<0.000000e+00> : vector<8x32xf32>
    %162 = tpu.matmul %159, %161, %cst_88 {dimension_numbers = #tpu.dot_dimension_numbers<[1], [0], [0], [1], [0, 0, 1, 1], [], []>} : vector<8x64xf32>, vector<64x32xf32>, vector<8x32xf32> -> vector<8x32xf32>
    %163 = vector.broadcast %14 : vector<1x32xf32> to vector<8x32xf32>
    %164 = arith.addf %162, %163 : vector<8x32xf32>
    %165 = arith.addf %130, %164 : vector<8x32xf32>
    %c0_89 = arith.constant 0 : index
    %c0_90 = arith.constant 0 : index
    %c0_91 = arith.constant 0 : index
    %166 = vector.load %arg8[%c0_89, %c0_90, %c0_91] : memref<1x8x32xf32, #tpu.memory_space<vmem>>, vector<1x8x32xf32>
    %167 = vector.shape_cast %166 : vector<1x8x32xf32> to vector<8x32xf32>
    %168 = vector.shape_cast %165 : vector<8x32xf32> to vector<1x8x32xf32>
    tpu.vector_store %arg8[%c0_89, %c0_90, %c0_91], %168 {strides = array<i32>} : memref<1x8x32xf32, #tpu.memory_space<vmem>>, vector<1x8x32xf32>,
    return
  }
  func.func @transform_0(%arg0: i32, %arg1: i32) -> (i32, i32, i32) {
    %c0_i32 = arith.constant 0 : i32
    %c0_i32_0 = arith.constant 0 : i32
    %c0_i32_1 = arith.constant 0 : i32
    return %arg0, %c0_i32, %c0_i32_0 : i32, i32, i32
  }
  func.func @transform_1(%arg0: i32, %arg1: i32) -> (i32, i32, i32) {
    %c0_i32 = arith.constant 0 : i32
    %c0_i32_0 = arith.constant 0 : i32
    %c0_i32_1 = arith.constant 0 : i32
    return %arg1, %c0_i32, %c0_i32_0 : i32, i32, i32
  }
  func.func @transform_2(%arg0: i32, %arg1: i32) -> (i32, i32, i32) {
    %c0_i32 = arith.constant 0 : i32
    %c0_i32_0 = arith.constant 0 : i32
    %c0_i32_1 = arith.constant 0 : i32
    return %arg1, %c0_i32, %c0_i32_0 : i32, i32, i32
  }
  func.func @transform_3(%arg0: i32, %arg1: i32) -> (i32, i32, i32) {
    %c0_i32 = arith.constant 0 : i32
    %c0_i32_0 = arith.constant 0 : i32
    %c0_i32_1 = arith.constant 0 : i32
    return %arg1, %c0_i32, %c0_i32_0 : i32, i32, i32
  }
  func.func @transform_4(%arg0: i32, %arg1: i32) -> (i32, i32, i32) {
    %c0_i32 = arith.constant 0 : i32
    %c0_i32_0 = arith.constant 0 : i32
    %c0_i32_1 = arith.constant 0 : i32
    return %arg1, %c0_i32, %c0_i32_0 : i32, i32, i32
  }
  func.func @transform_5(%arg0: i32, %arg1: i32) -> (i32, i32, i32) {
    %c0_i32 = arith.constant 0 : i32
    %c0_i32_0 = arith.constant 0 : i32
    %c0_i32_1 = arith.constant 0 : i32
    return %arg1, %c0_i32, %c0_i32_0 : i32, i32, i32
  }
  func.func @transform_6(%arg0: i32, %arg1: i32) -> (i32, i32, i32) {
    %c0_i32 = arith.constant 0 : i32
    %c0_i32_0 = arith.constant 0 : i32
    %c0_i32_1 = arith.constant 0 : i32
    return %arg0, %c0_i32, %c0_i32_0 : i32, i32, i32
  }
}

</mosaic_0001>

<bundles_post_ra>
// kernel: tpu_custom_call.1
= control target key start
LH: loop header
LB: loop body
LE: loop exit
PB: predicated region body
PF: predicated region fallthrough
CT: control target
= control target key end

     0   :  { %s2666_s0 = inlined_call_operand.hbm [shape: f32[2,8,32], index: 0, kind: input, shape index: {}]   ;;  %s2667_s1 = inlined_call_operand.hbm [shape: f32[2,8,96], index: 1, kind: input, shape index: {}]   ;;  %s2668_s2 = inlined_call_operand.vmem [shape: f32[2,32,96], index: 2, kind: input, shape index: {}]   ;;  %s2669_s3 = inlined_call_operand.vmem [shape: f32[2,32,32], index: 3, kind: input, shape index: {}]   ;;  %s2670_s4 = inlined_call_operand.vmem [shape: f32[2,32,64], index: 4, kind: input, shape index: {}]   ;;  %s2671_s5 = inlined_call_operand.vmem [shape: f32[2,64,32], index: 5, kind: input, shape index: {}]   ;;  %s2672_s6 = inlined_call_operand.hbm [shape: f32[2,8,32], index: 6, kind: output, shape index: {}]  }
   0x1   :  { %2685 = sst [smem:[#allocation23_spill]] %s2666_s0 }
   0x2   :  { %2686 = sst [smem:[#allocation24_spill]] %s2667_s1 }
   0x3   :  { %2687 = sst [smem:[#allocation25_spill]] %s2671_s5 }
   0x4   :  { %2688 = sst [smem:[#allocation26_spill]] %s2672_s6 }
   0x5   :  { %11 = vsyncpa [#allocation7], 0 }
   0x6   :  { %13 = vsyncpa [#allocation7 + $0x1], 0 }
   0x7   :  { %14 = vsyncpa [#allocation10], 0 }
   0x8   :  { %16 = vsyncpa [#allocation10 + $0x1], 0 }
   0x9   :  { %17 = vsyncpa [#allocation8], 0 }
   0xa   :  { %19 = vsyncpa [#allocation8 + $0x1], 0  ;;  %s2238_s21 = smov 0   ;;  %s2240_s22 = smov 0  }
   0xb   :  { %s2242_s23 = smov 0   ;;  %s2244_s24 = smov 0  }
   0xc   :  { %s2246_s25 = smov 0   ;;  %s2248_s26 = smov 0  }
   0xd   :  { %s2250_s27 = smov 0   ;;  %s2252_s28 = smov 0  }
   0xe   :  { %s2254_s29 = smov 0   ;;  %s2256_s30 = smov 0  }
   0xf   :  { %s2258_s7 = smov 0  }
  0x10 LB: > { %2689 = sst [smem:[#allocation15_spill]] %s2154_s24  ;;  %s1682_s8 = sadd.s32 4294967295, %s2182_s7   ;;  %s2182_s7 = sphi %s2258_s7, %s25_s7   ;;  %s2178_s30 = sphi %s2256_s30, %s2726_s30   ;;  %s2174_s29 = sphi %s2254_s29, %s2725_s29   ;;  %s2170_s28 = sphi %s2252_s28, %s2724_s28   ;;  %s2166_s27 = sphi %s2250_s27, %s2723_s27   ;;  %s2162_s26 = sphi %s2248_s26, %s2732_s26   ;;  %s2158_s25 = sphi %s2246_s25, %s2731_s25   ;;  %s2154_s24 = sphi %s2244_s24, %s2730_s24   ;;  %s2150_s23 = sphi %s2242_s23, %s2729_s23   ;;  %s2146_s22 = sphi %s2240_s22, %s2728_s22   ;;  %s2142_s21 = sphi %s2238_s21, %s2727_s21  }
  0x11   : > { %2690 = sst [smem:[#allocation16_spill]] %s2170_s28  ;;  %s1683_s9 = sadd.s32 4294967294, %s2182_s7  }
  0x12   : > { %2691 = sst [smem:[#allocation17_spill]] %s2174_s29  ;;  %p51_p0 = scmp.ne.s32.totalorder %s2162_s26, %s2158_s25 }
  0x13   : > { %2692 = sst [smem:[#allocation18_spill]] %s2178_s30  ;;  %p2676_p1 = scmp.eq.s32.totalorder %s2182_s7, 0 }
  0x14   : > { %p57_p2 = scmp.ne.s32.totalorder %s2158_s25, %s2154_s24  ;;  %p2302_p3 = scmp.eq.s32.totalorder %s1682_s8, 0 }
  0x15   : > { %p2308_p4 = por %p2676_p1, %p51_p0  ;;  %p211_p5 = scmp.eq.s32.totalorder %s1682_s8, 3 }
  0x16   : > { %p2314_p6 = por %p2302_p3, %p57_p2  ;;  %p217_p7 = scmp.eq.s32.totalorder %s1683_s9, 3 }
  0x17   : > { %p2318_p8 = por %p211_p5, %p51_p0  ;;  %p2677_p10 = scmp.lt.s32.totalorder %s2182_s7, 4 }
  0x18   : > { %p2322_p9 = por %p217_p7, %p57_p2  ;;  %s237_s17 = sand.u32 1, %s2162_s26  }
  0x19   : > { %s2696_s15 = scalar_select %p2318_p8, 1, 0 }
  0x1a   : > { %s2698_s16 = scalar_select %p2322_p9, 1, 0 }
  0x1b   : > { %2697 = sst [smem:[#allocation19_spill]] %s2696_s15  ;;  %s1687_s18 = sshll.u32 %s2178_s30, 7 }
  0x1c   : > { %2699 = sst [smem:[#allocation20_spill]] %s2698_s16  ;;  %s1686_s19 = sshll.u32 %s237_s17, 3 }
  0x1d   : > { %s2700_s0 = sld [smem:[#allocation23_spill]]  ;;  %s241_s10 = scalar_lea.vmem [#allocation6], %s1686_s19 }
  0x1e   : > { %s248_s24 = sshll.u32 %s241_s10, 4  ;;  %p2336_p11 = pnand %p2677_p10, %p2308_p4  ;;  %s249_s24 = int_to_ptr.vmem [resolvable:$true] %s248_s24 }
  0x1f   : > { %p1690_p12 = scmp.ge.s32.totalorder %s2182_s7, 1  ;;  %p303_p13 = scmp.lt.s32.totalorder %s2182_s7, 5 }
  0x20   : > { %s238_s16 = scalar_lea.sflag [#allocation7], %s237_s17  ;;  %p2004_p0 = pneg %p2336_p11 }
  0x21   : > { %s2015_s6 = scalar_lea.vmem %s249_s24, 128 }
  0x22   : > { %p2016_p2 = scmp.ne.s32.totalorder %s249_s24, %s2015_s6 }
  0x23   : > { %s246_s11 = scalar_lea.hbm %s2700_s0, %s1687_s18  ;;  %s2184_s18 = smov [#allocation6]  }
  0x24   : > { %p2018_p5 = pnand %p2016_p2, %p2004_p0  ;;  %s2020_s19 = sshll.u32 %s2184_s18, 4  ;;  %s2021_s19 = int_to_ptr.vmem [resolvable:$false] %s2020_s19 }
  0x25   : > { %s2022_s10 = scalar_lea.vmem %s2021_s19, 256  ;;  %p2023_p1 = scmp.lt.s32.totalorder %s249_s24, %s2021_s19 }
  0x26   : > { %p2019_p7 = pneg %p2018_p5  ;;  %p2024_p4 = scmp.lt.s32.totalorder %s2022_s10, %s2015_s6 }
  0x28   : > { %p2025_p10 = por %p2024_p4, %p2023_p1 }
  0x2a   : > { %p2026_p9 = pnand %p2025_p10, %p2019_p7 }
  0x2c   : > { %2029 = shalt.err (!%p2026_p9)
}
  0x2d   : > { %1868 = dma.hbm_to_vmem [thread:$0]  (!%p2336_p11), %s246_s11, 128, %s249_s24, %s238_s16  }
  0x2e   : > { %p2350_p1 = pnand %p1690_p12, %p303_p13  ;;  %s34_s13 = sadd.s32 1, %s2174_s29 }
  0x2f   : > { %p35_p9 = scmp.ge.s32.totalorder %s34_s13, 2  ;;  %s70_s17 = sadd.s32 1, %s2150_s23 }
  0x30   : > { %p77_p10 = scmp.ne.s32.totalorder %s2150_s23, %s2146_s22  ;;  %p83_p0 = scmp.ne.s32.totalorder %s2146_s22, %s2142_s21 }
  0x31   : > { %s2734_s13 = smov (%p35_p9, %s34_s13), 0  ;;  %s2704_s20 = sadd.s32 1, %s2178_s30 }
  0x32   : > { %2703 = sst [smem:[#allocation21_spill]] %s2734_s13  ;;  %s2736_s20 = smov (!%p35_p9, %s2704_s20), %s2178_s30 }
  0x33   : > { %s67_s24 = ssub.s32 %s2174_s29, %s2734_s13  ;;  %p2705_p11 = scmp.eq.s32.totalorder %s2182_s7, 0 }
  0x34   : > { %p39_p13 = scmp.ge.s32.totalorder %s2736_s20, 2  ;;  %p68_p2 = scmp.eq.s32.totalorder %s67_s24, 0 }
  0x35   : > { %p2369_p12 = por %p77_p10, %p2705_p11  ;;  %p2375_p5 = por %p83_p0, %p2302_p3 }
  0x36   : > { %s255_s21 = sand.u32 1, %s2150_s23   ;;  %s2738_s20 = smov (%p39_p13, %s2736_s20), 0 }
  0x37   : > { %2708 = sst [smem:[#allocation22_spill]] %s2738_s20  ;;  %s41_s9 = ssub.s32 %s2178_s30, %s2738_s20 }
  0x38   : > { %s2383_s8 = scalar_select %p68_p2, %s2150_s23, %s70_s17  }
  0x39   : > { %p42_p7 = scmp.eq.s32.totalorder %s41_s9, 0  ;;  %s1688_s18 = sshll.u32 %s255_s21, 3 }
  0x3a   : > { %s1689_s19 = sshll.u32 %s2174_s29, 7  ;;  %s2709_s10 = sadd.s32 1, %s2162_s26 }
  0x3b   : > { %s2391_s0 = scalar_select %p42_p7, %s2162_s26, %s2709_s10  }
  0x3c   : > { %s2710_s1 = sld [smem:[#allocation24_spill]]  ;;  %s259_s15 = scalar_lea.vmem [#allocation9], %s1688_s18 }
  0x3d   : > { %s266_s28 = sshll.u32 %s259_s15, 4  ;;  %p2711_p3 = scmp.lt.s32.totalorder %s2182_s7, 4  ;;  %s267_s28 = int_to_ptr.vmem [resolvable:$true] %s266_s28 }
  0x3e   : > { %s256_s17 = scalar_lea.sflag [#allocation10], %s255_s21  ;;  %s2043_s9 = scalar_lea.vmem %s267_s28, 128 }
  0x3f   : > { %p2400_p4 = pnand %p2711_p3, %p2369_p12  ;;  %p2044_p10 = scmp.ne.s32.totalorder %s267_s28, %s2043_s9 }
  0x40   : > { %s2185_s10 = smov [#allocation9]  }
  0x41   : > { %p2032_p9 = pneg %p2400_p4  ;;  %s2048_s13 = sshll.u32 %s2185_s10, 4  ;;  %s2049_s13 = int_to_ptr.vmem [resolvable:$false] %s2048_s13 }
  0x42   : > { %s264_s12 = scalar_lea.hbm %s2710_s1, %s1689_s19  ;;  %s2050_s18 = scalar_lea.vmem %s2049_s13, 256 }
  0x43   : > { %p2046_p0 = pnand %p2044_p10, %p2032_p9  ;;  %p2051_p13 = scmp.lt.s32.totalorder %s267_s28, %s2049_s13 }
  0x44   : > { %p2052_p2 = scmp.lt.s32.totalorder %s2050_s18, %s2043_s9 }
  0x45   : > { %p2047_p11 = pneg %p2046_p0 }
  0x46   : > { %p2053_p7 = por %p2052_p2, %p2051_p13 }
  0x48   : > { %p2054_p8 = pnand %p2053_p7, %p2047_p11 }
  0x4a   : > { %2057 = shalt.err (!%p2054_p8)
}
  0x4b   : > { %1871 = dma.hbm_to_vmem [thread:$0]  (!%p2400_p4), %s264_s12, 128, %s267_s28, %s256_s17  }
  0x4c   : > { %307 = sbr.rel (%p2350_p1) target bundleno = 2482 (0x9b2), region = 44  ;;  %s2411_s15 = sand.u32 (!%p2350_p1), 1, %s2158_s25  }
  0x4d   : > { %s1691_s11 = sshll.u32 (!%p2350_p1), %s2411_s15, 3  ;;  %s310_s21 = scalar_lea.sflag (!%p2350_p1), [#allocation7], %s2411_s15 }
  0x4e   : > { %s313_s19 = scalar_lea.vmem (!%p2350_p1), [#allocation6], %s1691_s11 }
  0x51   : > { %2129 = dma.done.wait (%p2314_p6), %s310_s21, 128  }
  0x52   : > { %2131 = vsyncadd (%p2314_p6), %s310_s21, 4294967168  ;;  %s318_s5 = sand.u32 1, %s2146_s22  }
  0x53   : > { %s2420_s28 = sshll.u32 %s318_s5, 3  ;;  %s319_s6 = scalar_lea.sflag [#allocation10], %s318_s5 }
  0x54   : > { %2133 = dma.done.wait (%p2375_p5), %s319_s6, 128  }
  0x55   : > { %2135 = vsyncadd (%p2375_p5), %s319_s6, 4294967168  ;;  %p376_p8 = scmp.lt.s32.totalorder %s2166_s27, 1  ;;  %s2713_s30 = sld [smem:[#allocation25_spill]] }
  0x56   : > { %p1702_p6 = scmp.ne.s32.totalorder %s2166_s27, 0 }
  0x57   : > { %s377_s12 = scalar_select %p376_p8, %s2166_s27, 1 }
  0x58   : > { %399 = sbr.rel (%p1702_p6) target bundleno = 95 (0x5f), region = 56 }
  0x59   : > { %s1723_s17 = sshll.u32 %s377_s12, 5  ;;  %s1726_s14 = sshll.u32 %s377_s12, 6 }
  0x5a   : > { %s2432_s13 = scalar_lea.vmem %s2668_s2, %s1723_s17  ;;  %s2437_s5 = scalar_lea.vmem %s2669_s3, %s1723_s17 }
  0x5b   : > { %s2442_s16 = scalar_lea.vmem %s2670_s4, %s1723_s17  ;;  %s2447_s29 = scalar_lea.vmem %s2713_s30, %s1726_s14 }
  0x5c   : > { %s2449_s12 = scalar_lea.vmem [#allocation11], %s1691_s11 }
  0x5d   : > { %v400_v0 = vld [vmem:[%s313_s19] sm:$0xff]  ;;  %vm401_vm0 = vcmask 261120  }
  0x5e   : > { %402 = vst.msk [vmem:[%s2449_s12] sm:$0xff] %vm401_vm0, %v400_v0 }
  0x5f PF: > { %vm405_vm1 = vcmask 261120   ;;  %v433_v8 = vld [vmem:[%s2432_s13 + $0x18] sm:$0xff]  ;;  %v2186_v9 = vmov 0.0   ;;  %v432_v10 = vld [vmem:[%s2432_s13 + $0x10] sm:$0xff]  ;;  %vm2187_vm2 = vmmov 0   ;;  %v431_v11 = vld [vmem:[%s2432_s13 + $0x8] sm:$0xff]  ;;  %v420_v16 = vlaneseq }
  0x60   : > { %1767 = vmatprep.subr.mxu1 %v2186_v9  ;;  %1775 = vmatprep.mubr.msk.f32.mxu1 %vm2187_vm2, %v2186_v9  ;;  %v430_v12 = vld [vmem:[%s2432_s13] sm:$0xff]  ;;  %s2714_s1 = scalar_lea.vmem [#allocation9], %s2420_s28  ;;  %vm512_vm3 = vcmask 64512   ;;  %s2188_s27 = smov 96   ;;  %vm1226_vm4 = vcmask 130112   ;;  %vm1232_vm5 = vcmask 195712  }
  0x61   : > { %1768 = vmatpush3.msra.mxu1 %v433_v8  ;;  %1788 = vmatprep.subr.mxu0 %v2186_v9  ;;  %v2474_v17 = vshrl.u32 %v420_v16, 7  ;;  %v2479_v19 = vld [vmem:[%s2714_s1] sm:$0xff]  ;;  %s2189_s30 = smov 120   ;;  %s2190_s20 = smov 88   ;;  %vm1238_vm6 = vcmask 261312   ;;  %vm1440_vm7 = vcmask 523264  }
  0x62   : > { %1769 = vmatprep.subr.mxu1 %v2186_v9  ;;  %1790 = vmatprep.mubr.msk.f32.mxu0 %vm2187_vm2, %v2186_v9  ;;  %s2191_s11 = smov 80   ;;  %s2192_s19 = smov 72  }
  0x63   : > { %1770 = vmatpush3.msra.mxu1 %v432_v10  ;;  %v422_v18 = vsub.s32 0, %v2474_v17  ;;  %v427_v20 = vsub.s32 1, %v2474_v17  ;;  %v436_v27 = vsub.s32 2, %v2474_v17  ;;  %s2193_s28 = smov 112   ;;  %s2194_s24 = smov 104  }
  0x64   : > { %1771 = vmatprep.subr.mxu1 %v2186_v9  ;;  %s2195_s17 = smov 64   ;;  %s2196_s14 = smov 48  }
  0x65   : > { %v2454_v1 = vld [vmem:[%s2449_s12] sm:$0xff]  ;;  %1772 = vmatpush3.msra.mxu1 %v431_v11  ;;  %v423_v21 = vrot.slane %v2479_v19, %v422_v18  ;;  %v428_v24 = vrot.slane %v2479_v19, %v427_v20  ;;  %v437_v28 = vrot.slane %v2479_v19, %v436_v27  ;;  %s2197_s9 = smov 40   ;;  %s2198_s10 = smov 56  }
  0x66   : > { %v406_v2 = vsel %vm405_vm1, %v2454_v1, 0.0  ;;  %1773 = vmatprep.subr.mxu1 %v2186_v9  ;;  %s2199_s13 = smov 16   ;;  %s2200_s18 = smov 8  }
  0x67   : > { %407 = vadd.xlane.f32.xlu0 %v406_v2  ;;  %1774 = vmatpush3.msra.mxu1 %v430_v12  ;;  %s2201_s21 = smov 24   ;;  %s1530_s6 = sshll.u32 %s2449_s12, 4  ;;  %s1531_s6 = int_to_ptr.vmem [resolvable:$true] %s1530_s6 }
  0x68   : > { %1778 = vmatprep.subr.mxu1 %v2186_v9 }
  0xf0   : > { %v408_v3 = vpop.xlane.xlu0 %407 }
  0xf1   : > { %v410_v4 = vmul.f32 0.03125, %v408_v3 }
  0xf3   : > { %v411_v5 = vsub.f32 %v2454_v1, %v410_v4 }
  0xf5   : > { %v412_v6 = vmul.f32 %v411_v5, %v411_v5 }
  0xf7   : > { %v413_v7 = vsel %vm405_vm1, %v412_v6, 0.0 }
  0xf8   : > { %414 = vadd.xlane.f32.xlu0 %v413_v7 }
 0x181   : > { %v415_v13 = vpop.xlane.xlu0 %414 }
 0x182   : > { %v416_v14 = vmul.f32 0.03125, %v415_v13 }
 0x184   : > { %v417_v15 = vadd.f32 1e-05, %v416_v14 }
 0x186   : > { %1982 = vrsqrt.f32 %v417_v15 }
 0x193   : > { %v1983_v22 = vpop.eup %1982 }
 0x194   : > { %v419_v23 = vmul.f32 %v1983_v22, %v411_v5 }
 0x196   : > { %v424_v25 = vmul.f32 %v423_v21, %v419_v23 }
 0x198   : > { %v429_v26 = vadd.f32 %v428_v24, %v424_v25 }
 0x19a   : > { %1776 = vmatmul.mubr.msk.f32.vlgmr.msra.gmra.mxu1 %vm405_vm1, %v429_v26 }
 0x19b   : > { %1780 = vmatprep.mubr.msk.f32.mxu1 %vm2187_vm2, %v2186_v9 }
 0x25a   : > { %v507_v29 = vpop.f32.mrf.mxu1 }
 0x25b   : > { %v2489_v30 = vadd.f32 %v507_v29, %v437_v28 }
 0x25c   : > { %v1777_v31 = vpop.f32.mrf.mxu1 }
 0x25d   : > { %515 = vrot.lane.b32.xlu1 %v2489_v30, %s2188_s27  ;;  %v511_v32 = vmul.f32 0.35355338, %v2489_v30 }
 0x25f   : > { %524 = vrot.lane.b32.xlu0 %v511_v32, %s2189_s30  ;;  %513 = vst.msk [vmem:[#allocation2] sm:$0xff] %vm512_vm3, %v511_v32  ;;  %s2717_s30 = sld [smem:[#allocation26_spill]] }
 0x261   : > { %529 = vrot.lane.b32.xlu1 %v2489_v30, %s2190_s20 }
 0x265   : > { %544 = vrot.lane.b32.xlu1 %v2489_v30, %s2191_s11  ;;  %s2718_s20 = smov %s2717_s30 }
 0x266   : > { %v569_v38 = vld [vmem:[#allocation2] sm:$0xff] }
 0x269   : > { %559 = vrot.lane.b32.xlu1 %v2489_v30, %s2192_s19  ;;  %s1517_s19 = scalar_lea.sflag [#allocation8], %s2411_s15 }
 0x26d   : > { %539 = vrot.lane.b32.xlu1 %v511_v32, %s2193_s28  ;;  %s2058_s28 = scalar_lea.vmem %s1531_s6, 128 }
 0x26e   : > { %p2059_p1 = scmp.ne.s32.totalorder %s1531_s6, %s2058_s28 }
 0x271   : > { %554 = vrot.lane.b32.xlu1 %v511_v32, %s2194_s24  ;;  %s2202_s24 = smov [#allocation11]  }
 0x2cf   : > { %v516_v33 = vpop.permute.xlu1 %515 }
 0x2d0   : > { %518 = vst.msk [vmem:[#allocation3] sm:$0xff] %vm512_vm3, %v516_v33 }
 0x2d1   : > { %v525_v34 = vpop.permute.xlu0 %524 }
 0x2d2   : > { %528 = vst.msk [vmem:[#allocation2 + $0x8] sm:$0xff] %vm512_vm3, %v525_v34 }
 0x2d3   : > { %v530_v35 = vpop.permute.xlu1 %529 }
 0x2d4   : > { %533 = vst.msk [vmem:[#allocation3 + $0x8] sm:$0xff] %vm512_vm3, %v530_v35 }
 0x2d7   : > { %v545_v36 = vpop.permute.xlu1 %544  ;;  %v573_v37 = vld [vmem:[#allocation3] sm:$0xff] }
 0x2d8   : > { %548 = vst.msk [vmem:[#allocation3 + $0x10] sm:$0xff] %vm512_vm3, %v545_v36  ;;  %1779 = vmatpush3.xpose.msk.msra.mxu1 %vm512_vm3, %v573_v37 }
 0x2d9   : > { %1783 = vmatprep.subr.mxu1 %v2186_v9  ;;  %v570_v41 = vld [vmem:[#allocation2 + $0x8] sm:$0xff] }
 0x2db   : > { %v560_v39 = vpop.permute.xlu1 %559  ;;  %1781 = vmatmul.mubr.msk.f32.vlgmr.msra.gmra.mxu1 %vm512_vm3, %v569_v38  ;;  %v574_v40 = vld [vmem:[#allocation3 + $0x8] sm:$0xff] }
 0x2dc   : > { %563 = vst.msk [vmem:[#allocation3 + $0x18] sm:$0xff] %vm512_vm3, %v560_v39  ;;  %1784 = vmatpush3.xpose.msk.msra.mxu1 %vm512_vm3, %v574_v40  ;;  %1785 = vmatprep.mubr.msk.f32.mxu1 %vm2187_vm2, %v2186_v9 }
 0x2dd   : > { %1793 = vmatprep.subr.mxu1 %v2186_v9 }
 0x2df   : > { %v540_v42 = vpop.permute.xlu1 %539  ;;  %1786 = vmatmul.mubr.msk.f32.vlgmr.msra.gmra.mxu1 %vm512_vm3, %v570_v41  ;;  %v575_v43 = vld [vmem:[#allocation3 + $0x10] sm:$0xff] }
 0x2e0   : > { %543 = vst.msk [vmem:[#allocation2 + $0x10] sm:$0xff] %vm512_vm3, %v540_v42  ;;  %1789 = vmatpush3.xpose.msk.msra.mxu0 %vm512_vm3, %v575_v43  ;;  %1795 = vmatprep.mubr.msk.f32.mxu1 %vm2187_vm2, %v2186_v9  ;;  %v1244_v42 = vld [vmem:[%s2437_s5 + $0x18] sm:$0xff]  ;;  %v1243_v43 = vld [vmem:[%s2437_s5 + $0x10] sm:$0xff] }
 0x2e1   : > { %1798 = vmatprep.subr.mxu0 %v2186_v9 }
 0x2e3   : > { %v555_v44 = vpop.permute.xlu1 %554  ;;  %v576_v45 = vld [vmem:[#allocation3 + $0x18] sm:$0xff] }
 0x2e4   : > { %558 = vst.msk [vmem:[#allocation2 + $0x18] sm:$0xff] %vm512_vm3, %v555_v44  ;;  %1794 = vmatpush3.xpose.msk.msra.mxu1 %vm512_vm3, %v576_v45  ;;  %v1242_v44 = vld [vmem:[%s2437_s5 + $0x8] sm:$0xff]  ;;  %v1241_v45 = vld [vmem:[%s2437_s5] sm:$0xff]  ;;  %s2715_s5 = sld [smem:[#allocation16_spill]] }
 0x2e5   : > { %1803 = vmatprep.subr.mxu1 %v2186_v9 }
 0x2e7   : > { %v571_v46 = vld [vmem:[#allocation2 + $0x10] sm:$0xff] }
 0x2e8   : > { %1791 = vmatmul.mubr.msk.f32.vlgmr.msra.gmra.mxu0 %vm512_vm3, %v571_v46 }
 0x2e9   : > { %1800 = vmatprep.mubr.msk.f32.mxu0 %vm2187_vm2, %v2186_v9 }
 0x2eb   : > { %v572_v47 = vld [vmem:[#allocation2 + $0x18] sm:$0xff] }
 0x2ec   : > { %1796 = vmatmul.mubr.msk.f32.vlgmr.msra.gmra.mxu1 %vm512_vm3, %v572_v47 }
 0x2ed   : > { %1805 = vmatprep.mubr.msk.f32.mxu1 %vm2187_vm2, %v2186_v9 }
 0x39b   : > { %v653_v48 = vpop.f32.mrf.mxu1 }
 0x39c   : > { %v885_v49 = vsel %vm512_vm3, %v653_v48, -inf }
 0x39d   : > { %886 = vmax.xlane.f32.xlu1 %v885_v49  ;;  %v1782_v50 = vpop.f32.mrf.mxu1 }
 0x39f   : > { %v729_v51 = vpop.f32.mrf.mxu1 }
 0x3a0   : > { %v888_v52 = vsel %vm512_vm3, %v729_v51, -inf }
 0x3a1   : > { %889 = vmax.xlane.f32.xlu0 %v888_v52  ;;  %v1787_v53 = vpop.f32.mrf.mxu1 }
 0x3a8   : > { %v805_v54 = vpop.f32.mrf.mxu0 }
 0x3a9   : > { %v891_v55 = vsel %vm512_vm3, %v805_v54, -inf }
 0x3aa   : > { %v1792_v56 = vpop.f32.mrf.mxu0  ;;  %892 = vmax.xlane.f32.xlu1 %v891_v55 }
 0x3ab   : > { %v1247_v56 = vsub.s32 3, %v2474_v17 }
 0x3ac   : > { %v881_v57 = vpop.f32.mrf.mxu1 }
 0x3ad   : > { %v894_v58 = vsel %vm512_vm3, %v881_v57, -inf }
 0x3ae   : > { %895 = vmax.xlane.f32.xlu0 %v894_v58  ;;  %v1797_v59 = vpop.f32.mrf.mxu1 }
 0x3bb   : > { %519 = vrot.lane.b32.xlu1 %v2489_v30, %s2195_s17  ;;  %s2062_s17 = sshll.u32 %s2202_s24, 4  ;;  %s2063_s17 = int_to_ptr.vmem [resolvable:$false] %s2062_s17 }
 0x3bc   : > { %p2065_p4 = scmp.lt.s32.totalorder %s1531_s6, %s2063_s17 }
 0x426   : > { %v887_v60 = vpop.xlane.xlu1 %886 }
 0x427   : > { %v897_v61 = vsub.f32 %v653_v48, %v887_v60 }
 0x429   : > { %v901_v62 = vmul.f32 1.442695, %v897_v61 }
 0x42a   : > { %v890_v63 = vpop.xlane.xlu0 %889 }
 0x42b   : > { %1984 = vpow2.f32 %v901_v62  ;;  %v898_v0 = vsub.f32 %v729_v51, %v890_v63 }
 0x42d   : > { %v903_v2 = vmul.f32 1.442695, %v898_v0 }
 0x42f   : > { %1986 = vpow2.f32 %v903_v2 }
 0x433   : > { %v893_v3 = vpop.xlane.xlu1 %892 }
 0x434   : > { %v899_v4 = vsub.f32 %v805_v54, %v893_v3 }
 0x436   : > { %v905_v5 = vmul.f32 1.442695, %v899_v4 }
 0x437   : > { %v520_v6 = vpop.permute.xlu1 %519  ;;  %v896_v7 = vpop.xlane.xlu0 %895 }
 0x438   : > { %v1985_v8 = vpop.eup %1984  ;;  %1988 = vpow2.f32 %v905_v5  ;;  %522 = vst.msk [vmem:[#allocation4] sm:$0xff] %vm512_vm3, %v520_v6  ;;  %v900_v10 = vsub.f32 %v881_v57, %v896_v7  ;;  %v1248_v57 = vrot.slane %v2479_v19, %v1247_v56  ;;  %v1349_v5 = vld [vmem:[%s2442_s16 + $0x18] sm:$0xff]  ;;  %v1347_v6 = vld [vmem:[%s2442_s16 + $0x8] sm:$0xff]  ;;  %v1346_v7 = vld [vmem:[%s2442_s16] sm:$0xff] }
 0x439   : > { %v909_v11 = vsel %vm512_vm3, %v1985_v8, 0.0 }
 0x43a   : > { %v907_v12 = vmul.f32 1.442695, %v900_v10  ;;  %910 = vadd.xlane.f32.xlu1 %v909_v11  ;;  %v1434_v10 = vld [vmem:[%s2447_s29 + $0x30] sm:$0xff]  ;;  %v1433_v11 = vld [vmem:[%s2447_s29 + $0x28] sm:$0xff] }
 0x43c   : > { %v1987_v13 = vpop.eup %1986  ;;  %1990 = vpow2.f32 %v907_v12  ;;  %v1432_v12 = vld [vmem:[%s2447_s29 + $0x20] sm:$0xff] }
 0x43d   : > { %v912_v14 = vsel %vm512_vm3, %v1987_v13, 0.0 }
 0x43e   : > { %913 = vadd.xlane.f32.xlu0 %v912_v14 }
 0x43f   : > { %v577_v15 = vld [vmem:[#allocation4] sm:$0xff] }
 0x440   : > { %1799 = vmatpush3.msra.mxu0 %v577_v15 }
 0x441   : > { %1808 = vmatprep.subr.mxu0 %v2186_v9 }
 0x445   : > { %v1989_v16 = vpop.eup %1988 }
 0x446   : > { %v915_v18 = vsel %vm512_vm3, %v1989_v16, 0.0 }
 0x447   : > { %916 = vadd.xlane.f32.xlu1 %v915_v18  ;;  %v1338_v18 = vsub.s32 4, %v2474_v17 }
 0x449   : > { %v1991_v20 = vpop.eup %1990 }
 0x44a   : > { %v918_v21 = vsel %vm512_vm3, %v1991_v20, 0.0 }
 0x44b   : > { %919 = vadd.xlane.f32.xlu0 %v918_v21  ;;  %v1339_v21 = vrot.slane %v2479_v19, %v1338_v18 }
 0x458   : > { %549 = vrot.lane.b32.xlu1 %v2489_v30, %s2196_s14  ;;  %s2064_s14 = scalar_lea.vmem %s2063_s17, 256 }
 0x459   : > { %p2066_p9 = scmp.lt.s32.totalorder %s2064_s14, %s2058_s28 }
 0x45b   : > { %p2067_p10 = por %p2066_p9, %p2065_p4 }
 0x45c   : > { %564 = vrot.lane.b32.xlu1 %v2489_v30, %s2197_s9 }
 0x461   : > { %534 = vrot.lane.b32.xlu0 %v2489_v30, %s2198_s10 }
 0x4c3   : > { %v911_v22 = vpop.xlane.xlu1 %910 }
 0x4c4   : > { %1992 = vrcp.f32 %v911_v22 }
 0x4c7   : > { %v914_v23 = vpop.xlane.xlu0 %913 }
 0x4c8   : > { %1994 = vrcp.f32 %v914_v23 }
 0x4d0   : > { %v917_v24 = vpop.xlane.xlu1 %916 }
 0x4d1   : > { %v1993_v25 = vpop.eup %1992  ;;  %1996 = vrcp.f32 %v917_v24 }
 0x4d2   : > { %v922_v26 = vmul.f32 %v1993_v25, %v1985_v8  ;;  %v1435_v8 = vld [vmem:[%s2447_s29 + $0x38] sm:$0xff] }
 0x4d4   : > { %1801 = vmatmul.mubr.msk.f32.vlgmr.msra.gmra.mxu0 %vm512_vm3, %v922_v26  ;;  %v550_v27 = vpop.permute.xlu1 %549  ;;  %v920_v28 = vpop.xlane.xlu0 %919 }
 0x4d5   : > { %553 = vst.msk [vmem:[#allocation4 + $0x10] sm:$0xff] %vm512_vm3, %v550_v27  ;;  %1998 = vrcp.f32 %v920_v28  ;;  %1810 = vmatprep.mubr.msk.f32.mxu0 %vm2187_vm2, %v2186_v9  ;;  %v1995_v32 = vpop.eup %1994  ;;  %v1430_v27 = vld [vmem:[%s2447_s29 + $0x10] sm:$0xff]  ;;  %v1429_v28 = vld [vmem:[%s2447_s29 + $0x8] sm:$0xff] }
 0x4d6   : > { %v924_v36 = vmul.f32 %v1995_v32, %v1987_v13  ;;  %v1431_v13 = vld [vmem:[%s2447_s29 + $0x18] sm:$0xff] }
 0x4d8   : > { %v565_v29 = vpop.permute.xlu1 %564  ;;  %v535_v30 = vpop.permute.xlu0 %534 }
 0x4d9   : > { %568 = vst.msk [vmem:[#allocation4 + $0x18] sm:$0xff] %vm512_vm3, %v565_v29  ;;  %538 = vst.msk [vmem:[#allocation4 + $0x8] sm:$0xff] %vm512_vm3, %v535_v30  ;;  %v1428_v29 = vld [vmem:[%s2447_s29] sm:$0xff]  ;;  %v1352_v30 = vsub.s32 6, %v2474_v17  ;;  %s1720_s29 = sshll.u32 %s2715_s5, 7 }
 0x4da   : > { %s1528_s11 = scalar_lea.hbm %s2717_s30, %s1720_s29 }
 0x4dc   : > { %v579_v31 = vld [vmem:[#allocation4 + $0x10] sm:$0xff] }
 0x4dd   : > { %1809 = vmatpush3.msra.mxu0 %v579_v31  ;;  %v1353_v31 = vrot.slane %v2479_v19, %v1352_v30 }
 0x4de   : > { %v1997_v33 = vpop.eup %1996  ;;  %1818 = vmatprep.subr.mxu0 %v2186_v9 }
 0x4df   : > { %v926_v34 = vmul.f32 %v1997_v33, %v1989_v16 }
 0x4e0   : > { %v578_v35 = vld [vmem:[#allocation4 + $0x8] sm:$0xff]  ;;  %v580_v38 = vld [vmem:[#allocation4 + $0x18] sm:$0xff] }
 0x4e1   : > { %1804 = vmatpush3.msra.mxu1 %v578_v35  ;;  %1811 = vmatmul.mubr.msk.f32.vlgmr.msra.gmra.mxu0 %vm512_vm3, %v926_v34 }
 0x4e2   : > { %v1999_v37 = vpop.eup %1998  ;;  %1806 = vmatmul.mubr.msk.f32.vlgmr.msra.gmra.mxu1 %vm512_vm3, %v924_v36  ;;  %1813 = vmatprep.subr.mxu1 %v2186_v9  ;;  %v1438_v36 = vsub.s32 7, %v2474_v17 }
 0x4e3   : > { %1814 = vmatpush3.msra.mxu1 %v580_v38  ;;  %1815 = vmatprep.mubr.msk.f32.mxu1 %vm2187_vm2, %v2186_v9  ;;  %v928_v39 = vmul.f32 %v1999_v37, %v1991_v20  ;;  %v1343_v20 = vsub.s32 5, %v2474_v17 }
 0x4e4   : > { %1826 = vmatprep.mubr.msk.f32.mxu0 %vm2187_vm2, %v2186_v9  ;;  %1829 = vmatprep.subr.mxu1 %v2186_v9  ;;  %v1439_v37 = vrot.slane %v2479_v19, %v1438_v36 }
 0x4e5   : > { %1819 = vmatpush3.msra.mxu0 %v1244_v42  ;;  %v1344_v24 = vrot.slane %v2479_v19, %v1343_v20 }
 0x4e6   : > { %1816 = vmatmul.mubr.msk.f32.vlgmr.msra.gmra.mxu1 %vm512_vm3, %v928_v39  ;;  %1820 = vmatprep.subr.mxu0 %v2186_v9 }
 0x4e7   : > { %1837 = vmatprep.mubr.msk.f32.mxu1 %vm2187_vm2, %v2186_v9  ;;  %1821 = vmatpush3.msra.mxu0 %v1243_v43 }
 0x4e8   : > { %1822 = vmatprep.subr.mxu0 %v2186_v9  ;;  %1830 = vmatpush3.msra.mxu1 %v1349_v5 }
 0x4e9   : > { %1823 = vmatpush3.msra.mxu0 %v1242_v44  ;;  %1831 = vmatprep.subr.mxu1 %v2186_v9 }
 0x4ea   : > { %1824 = vmatprep.subr.mxu0 %v2186_v9 }
 0x4eb   : > { %1825 = vmatpush3.msra.mxu0 %v1241_v45 }
 0x4ec   : > { %1840 = vmatprep.subr.mxu0 %v2186_v9 }
 0x594   : > { %v998_v40 = vpop.f32.mrf.mxu0 }
 0x595   : > { %1221 = vst.msk [vmem:[#allocation5] sm:$0xff] %vm512_vm3, %v998_v40 }
 0x596   : > { %v1802_v41 = vpop.f32.mrf.mxu0 }
 0x5a1   : > { %v1144_v46 = vpop.f32.mrf.mxu0 }
 0x5a2   : > { %1229 = vrot.lane.b32.xlu1 %v1144_v46, %s2199_s13  ;;  %v1071_v47 = vpop.f32.mrf.mxu1 }
 0x5a3   : > { %v1812_v48 = vpop.f32.mrf.mxu0  ;;  %1223 = vrot.lane.b32.xlu0 %v1071_v47, %s2200_s18 }
 0x5a4   : > { %v1807_v49 = vpop.f32.mrf.mxu1 }
 0x5a6   : > { %v1217_v50 = vpop.f32.mrf.mxu1 }
 0x5a7   : > { %1235 = vrot.lane.b32.xlu0 %v1217_v50, %s2201_s21 }
 0x5a8   : > { %v1817_v51 = vpop.f32.mrf.mxu1 }
 0x614   : > { %v1230_v53 = vpop.permute.xlu1 %1229 }
 0x615   : > { %v1224_v52 = vpop.permute.xlu0 %1223 }
 0x616   : > { %1227 = vst.msk [vmem:[#allocation5] sm:$0xff] %vm1226_vm4, %v1224_v52 }
 0x617   : > { %1233 = vst.msk [vmem:[#allocation5] sm:$0xff] %vm1232_vm5, %v1230_v53 }
 0x619   : > { %v1236_v54 = vpop.permute.xlu0 %1235 }
 0x61a   : > { %1239 = vst.msk [vmem:[#allocation5] sm:$0xff] %vm1238_vm6, %v1236_v54 }
 0x621   : > { %v1240_v55 = vld [vmem:[#allocation5] sm:$0xff] }
 0x622   : > { %1827 = vmatmul.mubr.msk.f32.vlgmr.msra.gmra.mxu0 %vm405_vm1, %v1240_v55 }
 0x623   : > { %1856 = vmatprep.mubr.msk.f32.mxu0 %vm2187_vm2, %v2186_v9  ;;  %1841 = vmatpush3.msra.mxu0 %v1435_v8 }
 0x624   : > { %1842 = vmatprep.subr.mxu0 %v2186_v9 }
 0x625   : > { %1843 = vmatpush3.msra.mxu0 %v1434_v10 }
 0x626   : > { %1844 = vmatprep.subr.mxu0 %v2186_v9 }
 0x627   : > { %1845 = vmatpush3.msra.mxu0 %v1433_v11 }
 0x628   : > { %1846 = vmatprep.subr.mxu0 %v2186_v9 }
 0x629   : > { %1847 = vmatpush3.msra.mxu0 %v1432_v12 }
 0x62a   : > { %1848 = vmatprep.subr.mxu0 %v2186_v9 }
 0x62b   : > { %1849 = vmatpush3.msra.mxu0 %v1431_v13 }
 0x62c   : > { %1850 = vmatprep.subr.mxu0 %v2186_v9 }
 0x62d   : > { %1851 = vmatpush3.msra.mxu0 %v1430_v27 }
 0x62e   : > { %1852 = vmatprep.subr.mxu0 %v2186_v9 }
 0x62f   : > { %1853 = vmatpush3.msra.mxu0 %v1429_v28 }
 0x630   : > { %1854 = vmatprep.subr.mxu0 %v2186_v9 }
 0x631   : > { %1855 = vmatpush3.msra.mxu0 %v1428_v29 }
 0x6e2   : > { %v1318_v58 = vpop.f32.mrf.mxu0 }
 0x6e3   : > { %v1319_v59 = vadd.f32 %v1318_v58, %v1248_v57 }
 0x6e4   : > { %v1828_v60 = vpop.f32.mrf.mxu0 }
 0x6e5   : > { %v2571_v61 = vadd.f32 %v1319_v59, %v2454_v1  ;;  %v1348_v1 = vld [vmem:[%s2442_s16 + $0x10] sm:$0xff]  ;;  %s2716_s16 = sld [smem:[#allocation19_spill]] }
 0x6e6   : > { %1832 = vmatpush3.msra.mxu1 %v1348_v1 }
 0x6e7   : > { %v1323_v62 = vsel %vm405_vm1, %v2571_v61, 0.0  ;;  %1833 = vmatprep.subr.mxu1 %v2186_v9 }
 0x6e8   : > { %1324 = vadd.xlane.f32.xlu1 %v1323_v62  ;;  %1834 = vmatpush3.msra.mxu1 %v1347_v6 }
 0x6e9   : > { %1835 = vmatprep.subr.mxu1 %v2186_v9 }
 0x6ea   : > { %1836 = vmatpush3.msra.mxu1 %v1346_v7 }
 0x6eb   : > { %p2719_p12 = scmp.ne.s32.totalorder %s2716_s16, 0 }
 0x6ed   : > { %p2060_p5 = pnand %p2059_p1, %p2719_p12 }
 0x6ef   : > { %p2061_p3 = pneg %p2060_p5 }
 0x6f1   : > { %p2068_p0 = pnand %p2067_p10, %p2061_p3 }
 0x771   : > { %v1325_v63 = vpop.xlane.xlu1 %1324 }
 0x772   : > { %v1326_v0 = vmul.f32 0.03125, %v1325_v63 }
 0x774   : > { %v1327_v2 = vsub.f32 %v2571_v61, %v1326_v0 }
 0x776   : > { %v1328_v3 = vmul.f32 %v1327_v2, %v1327_v2 }
 0x778   : > { %v1329_v4 = vsel %vm405_vm1, %v1328_v3, 0.0 }
 0x779   : > { %1330 = vadd.xlane.f32.xlu0 %v1329_v4 }
 0x802   : > { %v1331_v14 = vpop.xlane.xlu0 %1330 }
 0x803   : > { %v1332_v15 = vmul.f32 0.03125, %v1331_v14 }
 0x805   : > { %v1333_v16 = vadd.f32 1e-05, %v1332_v15 }
 0x807   : > { %2000 = vrsqrt.f32 %v1333_v16 }
 0x814   : > { %v2001_v22 = vpop.eup %2000 }
 0x815   : > { %v1335_v23 = vmul.f32 %v2001_v22, %v1327_v2 }
 0x817   : > { %v1340_v25 = vmul.f32 %v1339_v21, %v1335_v23 }
 0x819   : > { %v1345_v26 = vadd.f32 %v1344_v24, %v1340_v25 }
 0x81b   : > { %1838 = vmatmul.mubr.msk.f32.vlgmr.msra.gmra.mxu1 %vm405_vm1, %v1345_v26 }
 0x8db   : > { %v1423_v32 = vpop.f32.mrf.mxu1 }
 0x8dc   : > { %v1424_v33 = vadd.f32 %v1423_v32, %v1353_v31 }
 0x8dd   : > { %v1839_v34 = vpop.f32.mrf.mxu1 }
 0x8de   : > { %v1427_v35 = vmax.f32 %v1424_v33, 0.0 }
 0x8e0   : > { %1857 = vmatmul.mubr.msk.f32.vlgmr.msra.gmra.mxu0 %vm1440_vm7, %v1427_v35 }
 0x9a0   : > { %v1510_v9 = vpop.f32.mrf.mxu0 }
 0x9a1   : > { %v1511_v38 = vadd.f32 %v1510_v9, %v1439_v37 }
 0x9a2   : > { %v1858_v39 = vpop.f32.mrf.mxu0 }
 0x9a3   : > { %v1514_v40 = vadd.f32 %v1511_v38, %v2571_v61 }
 0x9a5   : > { %1515 = vst.msk [vmem:[%s2449_s12] sm:$0xff] %vm405_vm1, %v1514_v40 }
 0x9a6   : > { %2071 = shalt.err (!%p2068_p0)
}
 0x9a7   : > { %s2072_s9 = scalar_lea.hbm %s1528_s11, 128  ;;  %s2076_s10 = scalar_lea.hbm %s2718_s20, 256 }
 0x9a8   : > { %p2073_p11 = scmp.ne.s32.totalorder %s1528_s11, %s2072_s9  ;;  %p2077_p7 = scmp.lt.s32.totalorder %s1528_s11, %s2718_s20 }
 0x9a9   : > { %p2078_p8 = scmp.lt.s32.totalorder %s2076_s10, %s2072_s9 }
 0x9aa   : > { %p2074_p13 = pnand %p2073_p11, %p2719_p12 }
 0x9ab   : > { %p2079_p6 = por %p2078_p8, %p2077_p7 }
 0x9ac   : > { %p2075_p2 = pneg %p2074_p13 }
 0x9ae   : > { %p2080_p1 = pnand %p2079_p6, %p2075_p2 }
 0x9b0   : > { %2083 = shalt.err (!%p2080_p1)
}
 0x9b1   : > { %1863 = dma.vmem_to_hbm [thread:$0]  (%p2719_p12), %s1531_s6, 128, %s1528_s11, %s1517_s19  }
 0x9b2 PF: > { %s2720_s21 = sld [smem:[#allocation15_spill]]  ;;  %p1877_p5 = scmp.ge.s32.totalorder %s2182_s7, 2 }
 0x9b3   : > { %s2721_s5 = sld [smem:[#allocation20_spill]] }
 0x9b8   : > { %s1542_s29 = sand.u32 1, %s2720_s21  }
 0x9b9   : > { %p2722_p3 = scmp.ne.s32.totalorder %s2721_s5, 0  ;;  %s1543_s1 = scalar_lea.sflag [#allocation8], %s1542_s29 }
 0x9bb   : > { %p1873_p4 = pnand %p1877_p5, %p2722_p3 }
 0x9bd   : > { %p1874_p9 = pneg %p1873_p4 }
 0x9bf   : > { %2137 = dma.done.wait (%p1874_p9), %s1543_s1, 128  }
 0x9c0   : > { %2139 = vsyncadd (%p1874_p9), %s1543_s1, 4294967168  ;;  %s25_s7 = sadd.s32 1, %s2182_s7   ;;  %s2723_s27 = sld [smem:[#allocation17_spill]] }
 0x9c1   : > { %p22_p10 = scmp.ge.s32.totalorder %s25_s7, 6   ;;  %s2724_s28 = sld [smem:[#allocation18_spill]] }
 0x9c2   : > { %s2725_s29 = sld [smem:[#allocation21_spill]]  ;;  %s2727_s21 = smov %s2146_s22 }
 0x9c3   : > { %s2726_s30 = sld [smem:[#allocation22_spill]]  ;;  %s2728_s22 = smov %s2150_s23 }
 0x9c4   : > { %s2729_s23 = smov %s2383_s8  ;;  %s2730_s24 = smov %s2158_s25 }
 0x9c5   : > { %s2731_s25 = smov %s2162_s26  ;;  %s2732_s26 = smov %s2391_s0 }
 0x9c6   :  { %24 = sbr.rel (!%p22_p10) target bundleno = 16 (0x10), region = 127 }
 0x9cb   :  { %1548 = vsyncpa [#allocation7], 1 }
 0x9cc   :  { %1550 = vsyncpa [#allocation7 + $0x1], 1 }
 0x9cd   :  { %1551 = vsyncpa [#allocation10], 1 }
 0x9ce   :  { %1553 = vsyncpa [#allocation10 + $0x1], 1 }
 0x9cf   :  { %1554 = vsyncpa [#allocation8], 1 }
 0x9d0   :  { %1556 = vsyncpa [#allocation8 + $0x1], 1 }

</bundles_post_ra>
